<compile_context>
chip_gen: v7x
topology: tpu7x:2x2x1
jax: 0.10.0
libtpu: 0.0.40
codegen_flags: <defaults>
</compile_context>

<pallas_src>
import jax
import jax.numpy as jnp
from jax import lax
from jax.experimental import pallas as pl
from jax.experimental.pallas import tpu as pltpu
import numpy as np


# ----------------------------- VMEM sizing helpers -----------------------------

def _vmem_capacity_bytes():
    """Per-core VMEM capacity; falls back to the smallest modern value (v7x, 64 MiB)."""
    try:
        cap = getattr(pltpu.get_tpu_info(), "vmem_capacity_bytes", None)
        if cap:
            return int(cap)
    except Exception:
        pass
    return 64 * 1024 * 1024


def _vmem_budget_bytes(capacity):
    # ~24 MiB on v7x (64 MiB VMEM), ~56 MiB on v5e/v6e (128 MiB VMEM).
    return max(capacity // 2 - (8 << 20), 8 << 20)


def _pick_tile(total, fits):
    """Largest divisor of `total` that is sublane-aligned (mult of 8, or == total) and
    satisfies `fits`; if nothing fits, the smallest aligned divisor (minimizes VMEM)."""
    divisors = [d for d in range(1, total + 1) if total % d == 0]
    cands = [d for d in divisors if d % 8 == 0 or d == total]
    fitting = [d for d in cands if fits(d)]
    return max(fitting) if fitting else min(cands)


# ----------------------------- Pallas kernels ----------------------------------

def _encoder_pooler_kernel(emb_ref, mask_ref, w_ref, b_ref, out_ref):
    """One batch tile: masked mean over S, then tanh(pooled @ W + b). f32 accumulation."""
    emb = emb_ref[...].astype(jnp.float32)                           # [TB, S, H]
    mask = mask_ref[...].astype(jnp.float32)                         # [TB, S]
    summed = jnp.sum(emb * mask[:, :, None], axis=1)                 # [TB, H]
    denom = jnp.maximum(jnp.sum(mask, axis=1, keepdims=True), 1.0)   # [TB, 1]
    pooled = summed / denom
    out = jnp.tanh(
        jnp.dot(pooled, w_ref[...].astype(jnp.float32),
                preferred_element_type=jnp.float32)
        + b_ref[...].astype(jnp.float32))
    out_ref[...] = out.astype(out_ref.dtype)


def _dpr_loss_kernel(q_ref, ct_ref, labels_ref, partial_ref, logits_ref):
    """Per Bq-tile: logits = Q @ C^T (C^T already [H,Bc] lane-dense), stable log-softmax
    CE with the target gathered via an in-register iota==label mask. Each tile writes its
    own lane-dense partial-loss row so the grid axis can stay 'parallel'."""
    q = q_ref[...].astype(jnp.float32)                               # [TQ, H]
    ct = ct_ref[...].astype(jnp.float32)                             # [H, Bc]
    logits = jnp.dot(q, ct, preferred_element_type=jnp.float32)      # [TQ, Bc]
    logits_ref[...] = logits.astype(logits_ref.dtype)

    m = jnp.max(logits, axis=-1, keepdims=True)                      # [TQ, 1]
    lse = m + jnp.log(jnp.sum(jnp.exp(logits - m), axis=-1, keepdims=True))
    cols = lax.broadcasted_iota(jnp.int32, logits.shape, 1)          # [TQ, Bc]
    onehot = (cols == labels_ref[...]).astype(jnp.float32)           # labels [TQ,1]
    target = jnp.sum(logits * onehot, axis=-1, keepdims=True)        # [TQ, 1]
    partial = jnp.sum(lse - target, keepdims=True)                   # [1, 1]
    partial_ref[...] = jnp.broadcast_to(partial, partial_ref.shape).astype(
        partial_ref.dtype)


# ----------------------------- Wrappers -----------------------------------------

def encoder_pooler(emb, mask, w, b, tile_b=None):
    """pooler_output = tanh(masked_mean(emb, mask) @ W + b), tiled over the batch."""
    B, S, H = emb.shape
    capacity = _vmem_capacity_bytes()
    budget = _vmem_budget_bytes(capacity)
    emb_bytes = jnp.dtype(emb.dtype).itemsize
    mask_bytes = jnp.dtype(mask.dtype).itemsize
    w_bytes = jnp.dtype(w.dtype).itemsize

    def vmem_needed(tb):
        per_step = tb * (S * H * emb_bytes + S * mask_bytes + H * 4)
        resident = (H * H + H) * w_bytes
        return 2 * per_step + 2 * resident          # double-buffered blocks

    if tile_b is None:
        tile_b = _pick_tile(B, lambda tb: vmem_needed(tb) <= budget)
    if B % tile_b:
        tile_b = B

    vmem_limit = int(min(capacity - (4 << 20),
                         max(vmem_needed(tile_b) + (4 << 20), 32 << 20)))

    # TODO(synk): for small B, stack the query & context pooler calls into one pallas_call
    # (select W/b per block via scalar prefetch) so v7x's two TCs see a longer grid.
    return pl.pallas_call(
        _encoder_pooler_kernel,
        out_shape=jax.ShapeDtypeStruct((B, H), jnp.float32),
        grid=(B // tile_b,),
        in_specs=[
            pl.BlockSpec((tile_b, S, H), lambda i: (i, 0, 0)),
            pl.BlockSpec((tile_b, S), lambda i: (i, 0)),
            pl.BlockSpec((H, H), lambda i: (0, 0)),   # weights resident across steps
            pl.BlockSpec((1, H), lambda i: (0, 0)),
        ],
        out_specs=pl.BlockSpec((tile_b, H), lambda i: (i, 0)),
        compiler_params=pltpu.CompilerParams(
            dimension_semantics=("parallel",),         # batch tiles are independent
            vmem_limit_bytes=vmem_limit,
        ),
    )(emb, mask, w, b)


def dpr_logits_and_loss(q_vec, c_vec, labels, tile_q=None):
    """Fused logits + CrossEntropyLoss. C^T stays resident in VMEM; Bq tiles (usually 1)
    each emit a lane-dense partial loss summed in XLA, keeping the grid axis parallel."""
    Bq, H = q_vec.shape
    Bc, _ = c_vec.shape
    capacity = _vmem_capacity_bytes()
    budget = _vmem_budget_bytes(capacity)
    c_t = c_vec.T                                      # [H, Bc] lane-dense MXU RHS (once)

    def vmem_needed(tq):
        per_step = (tq * (H + Bc + 1) + 128) * 4
        resident = H * Bc * 4
        return 2 * per_step + 2 * resident

    if tile_q is None:
        tile_q = _pick_tile(Bq, lambda tq: vmem_needed(tq) <= budget)
    if Bq % tile_q:
        tile_q = Bq
    num_tiles = Bq // tile_q

    # TODO(synk): move labels to SMEM via PrefetchScalarGridSpec if tile_q < Bq matters;
    # with the default single-step grid the tiny VMEM column is already negligible.
    labels_col = labels.astype(jnp.int32).reshape(Bq, 1)
    vmem_limit = int(min(capacity - (4 << 20),
                         max(vmem_needed(tile_q) + (4 << 20), 32 << 20)))

    partial, logits = pl.pallas_call(
        _dpr_loss_kernel,
        out_shape=(
            jax.ShapeDtypeStruct((num_tiles, 128), jnp.float32),   # lane-dense partials
            jax.ShapeDtypeStruct((Bq, Bc), jnp.float32),
        ),
        grid=(num_tiles,),
        in_specs=[
            pl.BlockSpec((tile_q, H), lambda i: (i, 0)),
            pl.BlockSpec((H, Bc), lambda i: (0, 0)),        # C^T resident in VMEM
            pl.BlockSpec((tile_q, 1), lambda i: (i, 0)),    # labels (tiny int32 column)
        ],
        out_specs=(
            pl.BlockSpec((1, 128), lambda i: (i, 0)),       # per-tile partial loss row
            pl.BlockSpec((tile_q, Bc), lambda i: (i, 0)),   # lane-dense logits rows
        ),
        compiler_params=pltpu.CompilerParams(
            dimension_semantics=("parallel",),   # partials are independent; sum in XLA
            vmem_limit_bytes=vmem_limit,
        ),
    )(q_vec, c_t, labels_col)
    loss = jnp.sum(partial[:, 0]) / Bq
    return loss, logits


def model_forward(params, query_input_ids, query_attention_mask,
                  context_input_ids, context_attention_mask, labels,
                  encoder_tile_b=None, loss_tile_q=None):
    """Equivalent of Model.forward (gck_segment chunking has no forward effect)."""
    # TODO(synk): fuse the embedding gather into the pooler kernel (ids via scalar
    # prefetch, table HBM-resident with memory_space=pl.ANY, manually double-buffered
    # row DMAs) to avoid writing + re-reading [B,S,H]; kept as an XLA gather here because
    # row-granular DMAs need that pipeline to beat the current big-tile bf16 reads.
    q_emb = params["qry_emb"][query_input_ids]        # [Bq, S, H] bf16
    c_emb = params["ctx_emb"][context_input_ids]      # [Bc, S, H] bf16

    q_vec = encoder_pooler(q_emb, query_attention_mask.astype(jnp.float32),
                           params["qry_w"], params["qry_b"], tile_b=encoder_tile_b)
    c_vec = encoder_pooler(c_emb, context_attention_mask.astype(jnp.float32),
                           params["ctx_w"], params["ctx_b"], tile_b=encoder_tile_b)

    return dpr_logits_and_loss(q_vec, c_vec, labels, tile_q=loss_tile_q)


# ----------------------------- Pure-JAX reference --------------------------------

def _reference_forward(params, q_ids, q_mask, c_ids, c_mask, labels):
    def enc(table, w, b, ids, mask):
        emb = table[ids].astype(jnp.float32)
        m = mask.astype(jnp.float32)
        pooled = jnp.sum(emb * m[:, :, None], axis=1) / jnp.maximum(
            jnp.sum(m, axis=1, keepdims=True), 1.0)
        return jnp.tanh(pooled @ w.astype(jnp.float32) + b.astype(jnp.float32))

    q = enc(params["qry_emb"], params["qry_w"], params["qry_b"], q_ids, q_mask)
    c = enc(params["ctx_emb"], params["ctx_w"], params["ctx_b"], c_ids, c_mask)
    logits = q @ c.T
    logp = jax.nn.log_softmax(logits, axis=-1)
    loss = -jnp.mean(logp[jnp.arange(logits.shape[0]), labels])
    return loss, logits


# ----------------------------- Main ----------------------------------------------

if __name__ == "__main__":
    # Small but TPU-friendly shapes: hidden and context batch are lane-dense (128),
    # batches are multiples of the 8-row sublane tile.
    Bq, Bc, S, H, V = 32, 128, 16, 128, 512

    key = jax.random.PRNGKey(0)
    k_qe, k_ce, k_qw, k_cw, k_qi, k_ci, k_qm, k_cm = jax.random.split(key, 8)

    # bf16 storage for the big operands (emb tables, pooler weights); f32 accumulation
    # happens inside the kernels. Both the kernel path and the reference read the SAME
    # bf16-quantized values, so the comparison below is apples-to-apples.
    params = {
        "qry_emb": (jax.random.normal(k_qe, (V, H), jnp.float32) * 0.1).astype(jnp.bfloat16),
        "ctx_emb": (jax.random.normal(k_ce, (V, H), jnp.float32) * 0.1).astype(jnp.bfloat16),
        "qry_w": (jax.random.normal(k_qw, (H, H), jnp.float32) * 0.1).astype(jnp.bfloat16),
        "ctx_w": (jax.random.normal(k_cw, (H, H), jnp.float32) * 0.1).astype(jnp.bfloat16),
        "qry_b": jnp.zeros((1, H), jnp.bfloat16),
        "ctx_b": jnp.zeros((1, H), jnp.bfloat16),
    }

    query_input_ids = jax.random.randint(k_qi, (Bq, S), 0, V, dtype=jnp.int32)
    context_input_ids = jax.random.randint(k_ci, (Bc, S), 0, V, dtype=jnp.int32)
    query_attention_mask = (jax.random.uniform(k_qm, (Bq, S)) > 0.2).astype(jnp.float32)
    context_attention_mask = (jax.random.uniform(k_cm, (Bc, S)) > 0.2).astype(jnp.float32)
    # Ensure at least one unmasked token per row.
    query_attention_mask = query_attention_mask.at[:, 0].set(1.0)
    context_attention_mask = context_attention_mask.at[:, 0].set(1.0)
    labels = jnp.arange(Bq, dtype=jnp.int32) % Bc   # in-batch positives

    loss, logits = model_forward(params, query_input_ids, query_attention_mask,
                                 context_input_ids, context_attention_mask, labels)
    jax.block_until_ready((loss, logits))

    ref_loss, ref_logits = _reference_forward(params, query_input_ids,
                                              query_attention_mask,
                                              context_input_ids,
                                              context_attention_mask, labels)
    np.testing.assert_allclose(np.asarray(logits), np.asarray(ref_logits),
                               rtol=1e-4, atol=1e-4)
    np.testing.assert_allclose(np.asarray(loss), np.asarray(ref_loss),
                               rtol=1e-4, atol=1e-4)

    print("KERNEL_OK")
</pallas_src>

<mosaic_0001>
module attributes {stable_mosaic.version = 11 : i64} {
  func.func @_encoder_pooler_kernel(%arg0: i32, %arg1: memref<32x16x128xbf16, #tpu.memory_space<vmem>>, %arg2: memref<32x16xf32, #tpu.memory_space<vmem>>, %arg3: memref<128x128xbf16, #tpu.memory_space<vmem>>, %arg4: memref<1x128xbf16, #tpu.memory_space<vmem>>, %arg5: memref<32x128xf32, #tpu.memory_space<vmem>>) attributes {dimension_semantics = [#tpu.dimension_semantics<parallel>], iteration_bounds = array<i64: 1>, scalar_prefetch = 0 : i64, scratch_operands = 0 : i64, tpu.core_type = #tpu.core_type<tc>, window_params = [{transform_indices = @transform_0, window_bounds = array<i64: 32, 16, 128>}, {transform_indices = @transform_1, window_bounds = array<i64: 32, 16>}, {pipeline_mode = #tpu.pipeline_mode<synchronous>, transform_indices = @transform_2, window_bounds = array<i64: 128, 128>}, {pipeline_mode = #tpu.pipeline_mode<synchronous>, transform_indices = @transform_3, window_bounds = array<i64: 1, 128>}, {transform_indices = @transform_4, window_bounds = array<i64: 32, 128>}]} {
    %c0 = arith.constant 0 : index
    %c0_0 = arith.constant 0 : index
    %c0_1 = arith.constant 0 : index
    %0 = vector.load %arg1[%c0, %c0_0, %c0_1] : memref<32x16x128xbf16, #tpu.memory_space<vmem>>, vector<32x16x128xbf16>
    %1 = arith.extf %0 : vector<32x16x128xbf16> to vector<32x16x128xf32>
    %c0_2 = arith.constant 0 : index
    %c0_3 = arith.constant 0 : index
    %2 = vector.load %arg2[%c0_2, %c0_3] : memref<32x16xf32, #tpu.memory_space<vmem>>, vector<32x16xf32>
    %3 = vector.shape_cast %2 : vector<32x16xf32> to vector<32x16x1xf32>
    %4 = vector.broadcast %3 : vector<32x16x1xf32> to vector<32x16x128xf32>
    %5 = arith.mulf %1, %4 : vector<32x16x128xf32>
    %cst = arith.constant dense<0.000000e+00> : vector<32x128xf32>
    %6 = vector.multi_reduction <add>, %5, %cst [1] : vector<32x16x128xf32> to vector<32x128xf32>
    %cst_4 = arith.constant dense<0.000000e+00> : vector<32xf32>
    %7 = vector.multi_reduction <add>, %2, %cst_4 [1] : vector<32x16xf32> to vector<32xf32>
    %8 = vector.shape_cast %7 : vector<32xf32> to vector<32x1xf32>
    %cst_5 = arith.constant 1.000000e+00 : f32
    %9 = vector.broadcast %cst_5 : f32 to vector<32x1xf32>
    %10 = arith.maximumf %8, %9 : vector<32x1xf32>
    %11 = vector.broadcast %10 : vector<32x1xf32> to vector<32x128xf32>
    %12 = arith.divf %6, %11 : vector<32x128xf32>
    %c0_6 = arith.constant 0 : index
    %c0_7 = arith.constant 0 : index
    %13 = vector.load %arg3[%c0_6, %c0_7] : memref<128x128xbf16, #tpu.memory_space<vmem>>, vector<128x128xbf16>
    %14 = arith.extf %13 : vector<128x128xbf16> to vector<128x128xf32>
    %cst_8 = arith.constant dense<0.000000e+00> : vector<32x128xf32>
    %15 = tpu.matmul %12, %14, %cst_8 {dimension_numbers = #tpu.dot_dimension_numbers<[1], [0], [0], [1], [0, 0, 1, 1], [], []>} : vector<32x128xf32>, vector<128x128xf32>, vector<32x128xf32> -> vector<32x128xf32>
    %c0_9 = arith.constant 0 : index
    %c0_10 = arith.constant 0 : index
    %16 = vector.load %arg4[%c0_9, %c0_10] : memref<1x128xbf16, #tpu.memory_space<vmem>>, vector<1x128xbf16>
    %17 = arith.extf %16 : vector<1x128xbf16> to vector<1x128xf32>
    %18 = vector.broadcast %17 : vector<1x128xf32> to vector<32x128xf32>
    %19 = arith.addf %15, %18 : vector<32x128xf32>
    %20 = math.tanh %19 : vector<32x128xf32>
    %c0_11 = arith.constant 0 : index
    %c0_12 = arith.constant 0 : index
    %21 = vector.load %arg5[%c0_11, %c0_12] : memref<32x128xf32, #tpu.memory_space<vmem>>, vector<32x128xf32>
    tpu.vector_store %arg5[%c0_11, %c0_12], %20 {strides = array<i32>} : memref<32x128xf32, #tpu.memory_space<vmem>>, vector<32x128xf32>,
    return
  }
  func.func @transform_0(%arg0: i32) -> (i32, i32, i32) {
    %c0_i32 = arith.constant 0 : i32
    %c0_i32_0 = arith.constant 0 : i32
    %c0_i32_1 = arith.constant 0 : i32
    return %arg0, %c0_i32, %c0_i32_0 : i32, i32, i32
  }
  func.func @transform_1(%arg0: i32) -> (i32, i32) {
    %c0_i32 = arith.constant 0 : i32
    %c0_i32_0 = arith.constant 0 : i32
    return %arg0, %c0_i32 : i32, i32
  }
  func.func @transform_2(%arg0: i32) -> (i32, i32) {
    %c0_i32 = arith.constant 0 : i32
    %c0_i32_0 = arith.constant 0 : i32
    %c0_i32_1 = arith.constant 0 : i32
    return %c0_i32, %c0_i32_0 : i32, i32
  }
  func.func @transform_3(%arg0: i32) -> (i32, i32) {
    %c0_i32 = arith.constant 0 : i32
    %c0_i32_0 = arith.constant 0 : i32
    %c0_i32_1 = arith.constant 0 : i32
    return %c0_i32, %c0_i32_0 : i32, i32
  }
  func.func @transform_4(%arg0: i32) -> (i32, i32) {
    %c0_i32 = arith.constant 0 : i32
    %c0_i32_0 = arith.constant 0 : i32
    return %arg0, %c0_i32 : i32, i32
  }
}

</mosaic_0001>

<bundles_post_ra>
// kernel: tpu_custom_call.1
= control target key start
LH: loop header
LB: loop body
LE: loop exit
PB: predicated region body
PF: predicated region fallthrough
CT: control target
= control target key end

     0   :  { %9 = vsyncpa [#allocation3], 0  ;;  %s2086_s0 = inlined_call_operand.hbm [shape: bf16[32,16,128], index: 0, kind: input, shape index: {}]   ;;  %s2087_s1 = inlined_call_operand.vmem [shape: f32[32,16], index: 1, kind: input, shape index: {}]   ;;  %s2088_s2 = inlined_call_operand.hbm [shape: bf16[128,128], index: 2, kind: input, shape index: {}]   ;;  %s2089_s3 = inlined_call_operand.vmem [shape: bf16[1,128], index: 3, kind: input, shape index: {}]   ;;  %s2090_s4 = inlined_call_operand.hbm [shape: f32[32,128], index: 4, kind: output, shape index: {}]  }
   0x1   :  { %10 = vsyncpa [#allocation6], 0 }
   0x2   :  { %11 = vsyncpa [#allocation4], 0  ;;  %s1666_s15 = smov [#allocation2]   ;;  %s1594_s19 = scalar_lea.hbm %s2086_s0, 4096 }
   0x3   :  { %s17_s16 = sshll.u32 %s1666_s15, 4  ;;  %p1595_p0 = scmp.ne.s32.totalorder %s2086_s0, %s1594_s19  ;;  %s18_s16 = int_to_ptr.vmem [resolvable:$true] %s17_s16 }
   0x4   :  { %p1598_p1 = scmp.lt.u32.totalorder %s1594_s19, %s2086_s0 }
   0x6   :  { %p1600_p2 = pnand %p1598_p1, %p1595_p0 }
   0x8   :  { %1603 = shalt.err (!%p1600_p2)
}
   0x9   :  { %s1604_s24 = scalar_lea.vmem %s18_s16, 4096  ;;  %p1609_p4 = scmp.lt.s32.totalorder %s18_s16, %s18_s16 }
   0xa   :  { %p1605_p3 = scmp.ne.s32.totalorder %s18_s16, %s1604_s24  ;;  %p1610_p5 = scmp.lt.s32.totalorder %s1604_s24, %s1604_s24 }
   0xc   :  { %p1611_p6 = por %p1610_p5, %p1609_p4 }
   0xe   :  { %p1612_p7 = pnand %p1611_p6, %p1605_p3 }
  0x10   :  { %1615 = shalt.err (!%p1612_p7)
}
  0x11   :  { %s1667_s25 = smov 64   ;;  %s1668_s26 = smov 4  }
  0x12   :  { %23 = dma.hbm_to_vmem [thread:$0]  %s2086_s0, 4096, %s18_s16, [#allocation3], %s1667_s25, %s1667_s25, %s1668_s26  }
  0x13   :  { %s1669_s29 = smov [#allocation5]   ;;  %s1616_s7 = scalar_lea.hbm %s2088_s2, 1024 }
  0x14   :  { %s31_s30 = sshll.u32 %s1669_s29, 4  ;;  %p1617_p8 = scmp.ne.s32.totalorder %s2088_s2, %s1616_s7  ;;  %s32_s30 = int_to_ptr.vmem [resolvable:$true] %s31_s30 }
  0x15   :  { %p1620_p9 = scmp.lt.u32.totalorder %s1616_s7, %s2088_s2 }
  0x17   :  { %p1622_p10 = pnand %p1620_p9, %p1617_p8 }
  0x19   :  { %1625 = shalt.err (!%p1622_p10)
}
  0x1a   :  { %s1626_s12 = scalar_lea.vmem %s32_s30, 1024  ;;  %p1631_p12 = scmp.lt.s32.totalorder %s32_s30, %s32_s30 }
  0x1b   :  { %p1627_p11 = scmp.ne.s32.totalorder %s32_s30, %s1626_s12  ;;  %p1632_p13 = scmp.lt.s32.totalorder %s1626_s12, %s1626_s12 }
  0x1d   :  { %p1633_p0 = por %p1632_p13, %p1631_p12 }
  0x1f   :  { %p1634_p1 = pnand %p1633_p0, %p1627_p11 }
  0x21   :  { %1637 = shalt.err (!%p1634_p1)
}
  0x22   :  { %37 = dma.hbm_to_vmem [thread:$0]  %s2088_s2, 1024, %s32_s30, [#allocation6], %s1667_s25, %s1667_s25, %s1668_s26  }
  0x23   :  { %1660 = dma.done.wait [#allocation3], 4096  }
  0x24   :  { %1661 = vsyncadd [#allocation3], 4294963200 }
  0x25   :  { %1662 = dma.done.wait [#allocation6], 1024  }
  0x26   :  { %1663 = vsyncadd [#allocation6], 4294966272  ;;  %v178_v0 = vlaneseq  ;;  %vm818_vm0 = vcmask 130048   ;;  %v1725_v1 = vld [vmem:[%s2087_s1 + $0x8] sm:$0xff]  ;;  %v1730_v2 = vld [vmem:[%s2087_s1] sm:$0xff]  ;;  %vm1034_vm1 = vcmask 1041409  }
  0x27   :  { %v1735_v3 = vld [vmem:[%s2087_s1 + $0x18] sm:$0xff]  ;;  %v822_v5 = vsel %vm818_vm0, %v1725_v1, 0.0  ;;  %v819_v6 = vsel %vm818_vm0, %v1730_v2, 0.0  ;;  %v1742_v7 = vld [vmem:[%s2087_s1 + $0x10] sm:$0xff]  ;;  %v1371_v52 = vld [vmem:[#allocation2 + $0x8] sm:$0xff]   ;;  %vm1037_vm2 = vcmask 1042434  }
  0x28   :  { %v179_v4 = vshrl.u32 %v178_v0, 7  ;;  %823 = vadd.xlane.f32.xlu1 %v822_v5  ;;  %820 = vadd.xlane.f32.xlu0 %v819_v6  ;;  %v828_v9 = vsel %vm818_vm0, %v1735_v3, 0.0  ;;  %v825_v10 = vsel %vm818_vm0, %v1742_v7, 0.0  ;;  %v1218_v56 = vunpack.c.h.bf16 %v1371_v52  ;;  %v1340_v58 = vld [vmem:[#allocation5] sm:$0xff]   ;;  %v1402_v0 = vld [vmem:[#allocation5 + $0x8] sm:$0xff]   ;;  %s1670_s22 = smov [#allocation7]  }
  0x29   :  { %v1217_v57 = vunpack.c.l.bf16 %v1371_v52  ;;  %1468 = vmatprep.subr.bf16.mxu0 %v1340_v58  ;;  %1499 = vmatprep.subr.bf16.mxu1 %v1340_v58  ;;  %vm1040_vm3 = vcmask 1043459   ;;  %vm1043_vm4 = vcmask 1044484   ;;  %vm1046_vm5 = vcmask 1045509  }
  0x2a   :  { %v235_v8 = vsub.s32 5, %v179_v4  ;;  %v246_v11 = vsub.s32 6, %v179_v4  ;;  %v257_v18 = vsub.s32 7, %v179_v4  ;;  %v191_v19 = vsub.s32 1, %v179_v4  ;;  %1470 = vmatpush3.bf16.msra.mxu0 %v1340_v58  ;;  %1507 = vmatpush3.bf16.msra.mxu1 %v1340_v58 }
  0x2b   :  { %v202_v25 = vsub.s32 2, %v179_v4  ;;  %v1788_v33 = vsub.s32 0, %v179_v4  ;;  %v213_v35 = vsub.s32 3, %v179_v4  ;;  %v224_v41 = vsub.s32 4, %v179_v4  ;;  %1472 = vmatprep.subr.bf16.mxu0 %v1402_v0  ;;  %1500 = vmatprep.subr.bf16.mxu1 %v1402_v0  ;;  %v1372_v4 = vld [vmem:[#allocation2 + $0x10] sm:$0xff]  }
  0x2c   :  { %829 = vadd.xlane.f32.xlu1 %v828_v9  ;;  %826 = vadd.xlane.f32.xlu0 %v825_v10  ;;  %v1747_v12 = vrot.slane %v1730_v2, %v235_v8  ;;  %v1750_v13 = vrot.slane %v1742_v7, %v235_v8  ;;  %v1753_v14 = vrot.slane %v1730_v2, %v246_v11  ;;  %vm1049_vm6 = vcmask 1046534  }
  0x2d   :  { %v1756_v15 = vrot.slane %v1725_v1, %v235_v8  ;;  %v1759_v16 = vrot.slane %v1742_v7, %v246_v11  ;;  %v1762_v17 = vrot.slane %v1735_v3, %v235_v8  ;;  %v1765_v20 = vrot.slane %v1730_v2, %v257_v18 }
  0x2e   :  { %v192_v21 = vrot.slane %v1730_v2, %v191_v19  ;;  %v1769_v22 = vrot.slane %v1725_v1, %v246_v11  ;;  %v368_v23 = vrot.slane %v1742_v7, %v191_v19  ;;  %v1773_v24 = vrot.slane %v1742_v7, %v257_v18  ;;  %1474 = vmatpush3.bf16.msra.mxu0 %v1402_v0 }
  0x2f   :  { %v1776_v26 = vrot.slane %v1735_v3, %v246_v11  ;;  %v203_v27 = vrot.slane %v1730_v2, %v202_v25  ;;  %v1780_v28 = vrot.slane %v1725_v1, %v257_v18  ;;  %v280_v29 = vrot.slane %v1725_v1, %v191_v19  ;;  %1508 = vmatpush3.bf16.msra.mxu1 %v1402_v0 }
  0x30   :  { %v1784_v30 = vrot.slane %v1735_v3, %v257_v18  ;;  %v379_v31 = vrot.slane %v1742_v7, %v202_v25  ;;  %v456_v32 = vrot.slane %v1735_v3, %v191_v19  ;;  %v181_v34 = vrot.slane %v1730_v2, %v1788_v33 }
  0x31   :  { %v214_v36 = vrot.slane %v1730_v2, %v213_v35  ;;  %v291_v37 = vrot.slane %v1725_v1, %v202_v25  ;;  %v357_v38 = vrot.slane %v1742_v7, %v1788_v33  ;;  %v390_v39 = vrot.slane %v1742_v7, %v213_v35 }
  0x32   :  { %v467_v40 = vrot.slane %v1735_v3, %v202_v25  ;;  %v225_v42 = vrot.slane %v1730_v2, %v224_v41  ;;  %v269_v43 = vrot.slane %v1725_v1, %v1788_v33  ;;  %v302_v44 = vrot.slane %v1725_v1, %v213_v35  ;;  %v1388_v25 = vld [vmem:[#allocation2 + $0x90] sm:$0xff]  }
  0x33   :  { %v401_v45 = vrot.slane %v1742_v7, %v224_v41  ;;  %v445_v46 = vrot.slane %v1735_v3, %v1788_v33  ;;  %v478_v47 = vrot.slane %v1735_v3, %v213_v35  ;;  %v313_v48 = vrot.slane %v1725_v1, %v224_v41  ;;  %v1387_v1 = vld [vmem:[#allocation2 + $0x88] sm:$0xff]  }
  0x34   :  { %v489_v49 = vrot.slane %v1735_v3, %v224_v41  ;;  %v1281_v7 = vunpack.c.l.bf16 %v1387_v1  ;;  %v1282_v8 = vunpack.c.h.bf16 %v1387_v1  ;;  %v1221_v11 = vunpack.c.l.bf16 %v1372_v4 }
  0x35   :  { %v1222_v19 = vunpack.c.h.bf16 %v1372_v4  ;;  %vm1052_vm7 = vcmask 1047559  }
  0x3d   :  { %198 = vbcast.lane.b32.xlu1 %v192_v21, 264 }
  0x41   :  { %370 = vbcast.lane.b32.xlu1 %v368_v23, 256 }
  0x42   :  { %194 = vbcast.lane.b32.xlu0 %v192_v21, 256 }
  0x45   :  { %374 = vbcast.lane.b32.xlu1 %v368_v23, 264 }
  0x46   :  { %205 = vbcast.lane.b32.xlu0 %v203_v27, 256 }
  0x49   :  { %209 = vbcast.lane.b32.xlu1 %v203_v27, 264 }
  0x4a   :  { %282 = vbcast.lane.b32.xlu0 %v280_v29, 256 }
  0x4d   :  { %286 = vbcast.lane.b32.xlu1 %v280_v29, 264 }
  0x4e   :  { %381 = vbcast.lane.b32.xlu0 %v379_v31, 256 }
  0x51   :  { %385 = vbcast.lane.b32.xlu1 %v379_v31, 264 }
  0x52   :  { %458 = vbcast.lane.b32.xlu0 %v456_v32, 256 }
  0x55   :  { %462 = vbcast.lane.b32.xlu1 %v456_v32, 264 }
  0x56   :  { %183 = vbcast.lane.b32.xlu0 %v181_v34, 256 }
  0x59   :  { %187 = vbcast.lane.b32.xlu1 %v181_v34, 264 }
  0x5a   :  { %216 = vbcast.lane.b32.xlu0 %v214_v36, 256 }
  0x5d   :  { %220 = vbcast.lane.b32.xlu1 %v214_v36, 264 }
  0x5e   :  { %293 = vbcast.lane.b32.xlu0 %v291_v37, 256 }
  0x61   :  { %297 = vbcast.lane.b32.xlu1 %v291_v37, 264  ;;  %v1285_v37 = vunpack.c.l.bf16 %v1388_v25 }
  0x62   :  { %359 = vbcast.lane.b32.xlu0 %v357_v38, 256 }
  0x65   :  { %363 = vbcast.lane.b32.xlu1 %v357_v38, 264 }
  0x66   :  { %392 = vbcast.lane.b32.xlu0 %v390_v39, 256 }
  0x69   :  { %396 = vbcast.lane.b32.xlu1 %v390_v39, 264 }
  0x6a   :  { %469 = vbcast.lane.b32.xlu0 %v467_v40, 256 }
  0x6d   :  { %473 = vbcast.lane.b32.xlu1 %v467_v40, 264 }
  0x6e   :  { %227 = vbcast.lane.b32.xlu0 %v225_v42, 256 }
  0x71   :  { %231 = vbcast.lane.b32.xlu1 %v225_v42, 264  ;;  %v1405_v42 = vld [vmem:[#allocation5 + $0x20] sm:$0xff]  }
  0x72   :  { %271 = vbcast.lane.b32.xlu0 %v269_v43, 256 }
  0x75   :  { %275 = vbcast.lane.b32.xlu1 %v269_v43, 264  ;;  %v1406_v43 = vld [vmem:[#allocation5 + $0x28] sm:$0xff]  }
  0x76   :  { %304 = vbcast.lane.b32.xlu0 %v302_v44, 256 }
  0x79   :  { %308 = vbcast.lane.b32.xlu1 %v302_v44, 264 }
  0x7a   :  { %403 = vbcast.lane.b32.xlu0 %v401_v45, 256 }
  0x7d   :  { %407 = vbcast.lane.b32.xlu1 %v401_v45, 264  ;;  %v1286_v45 = vunpack.c.h.bf16 %v1388_v25 }
  0x7e   :  { %447 = vbcast.lane.b32.xlu0 %v445_v46, 256 }
  0x81   :  { %451 = vbcast.lane.b32.xlu1 %v445_v46, 264 }
  0x82   :  { %480 = vbcast.lane.b32.xlu0 %v478_v47, 256 }
  0x85   :  { %484 = vbcast.lane.b32.xlu1 %v478_v47, 264 }
  0x86   :  { %238 = vbcast.lane.b32.xlu0 %v1747_v12, 256 }
  0x89   :  { %242 = vbcast.lane.b32.xlu1 %v1747_v12, 264  ;;  %v1403_v12 = vld [vmem:[#allocation5 + $0x10] sm:$0xff]  }
  0x8a   :  { %315 = vbcast.lane.b32.xlu0 %v313_v48, 256  ;;  %1476 = vmatprep.subr.bf16.mxu0 %v1403_v12 }
  0x8b   :  { %1501 = vmatprep.subr.bf16.mxu1 %v1403_v12  ;;  %1478 = vmatpush3.bf16.msra.mxu0 %v1403_v12 }
  0x8c   :  { %1509 = vmatpush3.bf16.msra.mxu1 %v1403_v12 }
  0x8d   :  { %319 = vbcast.lane.b32.xlu1 %v313_v48, 264 }
  0x8e   :  { %414 = vbcast.lane.b32.xlu0 %v1750_v13, 256 }
  0x91   :  { %418 = vbcast.lane.b32.xlu1 %v1750_v13, 264 }
  0x92   :  { %491 = vbcast.lane.b32.xlu0 %v489_v49, 256 }
  0x95   :  { %495 = vbcast.lane.b32.xlu1 %v489_v49, 264 }
  0x96   :  { %249 = vbcast.lane.b32.xlu0 %v1753_v14, 256 }
  0x99   :  { %253 = vbcast.lane.b32.xlu1 %v1753_v14, 264  ;;  %v1379_v14 = vld [vmem:[#allocation2 + $0x48] sm:$0xff]  }
  0x9a   :  { %326 = vbcast.lane.b32.xlu0 %v1756_v15, 256  ;;  %v1250_v32 = vunpack.c.h.bf16 %v1379_v14 }
  0x9d   :  { %330 = vbcast.lane.b32.xlu1 %v1756_v15, 264 }
  0x9e   :  { %425 = vbcast.lane.b32.xlu0 %v1759_v16, 256 }
  0xa1   :  { %429 = vbcast.lane.b32.xlu1 %v1759_v16, 264 }
  0xa2   :  { %502 = vbcast.lane.b32.xlu0 %v1762_v17, 256 }
  0xa5   :  { %506 = vbcast.lane.b32.xlu1 %v1762_v17, 264 }
  0xa6   :  { %260 = vbcast.lane.b32.xlu0 %v1765_v20, 256 }
  0xa9   :  { %264 = vbcast.lane.b32.xlu1 %v1765_v20, 264 }
  0xaa   :  { %337 = vbcast.lane.b32.xlu0 %v1769_v22, 256 }
  0xad   :  { %341 = vbcast.lane.b32.xlu1 %v1769_v22, 264 }
  0xae   :  { %436 = vbcast.lane.b32.xlu0 %v1773_v24, 256 }
  0xb1   :  { %440 = vbcast.lane.b32.xlu1 %v1773_v24, 264  ;;  %v1249_v24 = vunpack.c.l.bf16 %v1379_v14  ;;  %v1408_v14 = vld [vmem:[#allocation5 + $0x38] sm:$0xff]  }
  0xb2   :  { %513 = vbcast.lane.b32.xlu0 %v1776_v26, 256 }
  0xb5   :  { %v1827_v50 = vpop.xlane.xlu1 %823  ;;  %v821_v51 = vpop.xlane.xlu0 %820  ;;  %517 = vbcast.lane.b32.xlu1 %v1776_v26, 264  ;;  %v1404_v26 = vld [vmem:[#allocation5 + $0x18] sm:$0xff]  }
  0xb6   :  { %348 = vbcast.lane.b32.xlu0 %v1780_v28, 256  ;;  %v1831_v53 = vmax.f32 %v821_v51, 1.0  ;;  %1480 = vmatprep.subr.bf16.mxu0 %v1404_v26  ;;  %v1843_v35 = vmax.f32 %v1827_v50, 1.0  ;;  %v1395_v51 = vld [vmem:[#allocation2 + $0xc8] sm:$0xff]  }
  0xb7   :  { %1502 = vmatprep.subr.bf16.mxu1 %v1404_v26  ;;  %1482 = vmatpush3.bf16.msra.mxu0 %v1404_v26 }
  0xb8   :  { %v839_v60 = vrot.slane %v1831_v53, 1  ;;  %v840_v36 = vrot.slane %v1831_v53, 2  ;;  %1510 = vmatpush3.bf16.msra.mxu1 %v1404_v26  ;;  %1484 = vmatprep.subr.bf16.mxu0 %v1405_v42  ;;  %v846_v52 = vrot.slane %v1843_v35, 1 }
  0xb9   :  { %v1833_v54 = vpop.xlane.xlu1 %829  ;;  %v827_v55 = vpop.xlane.xlu0 %826  ;;  %352 = vbcast.lane.b32.xlu1 %v1780_v28, 264  ;;  %1503 = vmatprep.subr.bf16.mxu1 %v1405_v42 }
  0xba   :  { %524 = vbcast.lane.b32.xlu0 %v1784_v30, 256  ;;  %1522 = vrcp.f32 %v839_v60  ;;  %v1839_v9 = vmax.f32 %v827_v55, 1.0  ;;  %v1407_v60 = vld [vmem:[#allocation5 + $0x30] sm:$0xff]  }
  0xbb   :  { %1486 = vmatpush3.bf16.msra.mxu0 %v1405_v42 }
  0xbc   :  { %v853_v20 = vrot.slane %v1839_v9, 1  ;;  %1488 = vmatprep.subr.bf16.mxu0 %v1406_v43  ;;  %1511 = vmatpush3.bf16.msra.mxu1 %v1405_v42  ;;  %v1858_v42 = vld [vmem:[#allocation2 + $0x80] sm:$0xff]  }
  0xbd   :  { %v199_v59 = vpop.permute.xlu1 %198  ;;  %v195_v61 = vpop.permute.xlu0 %194  ;;  %528 = vbcast.lane.b32.xlu1 %v1784_v30, 264  ;;  %1504 = vmatprep.subr.bf16.mxu1 %v1406_v43 }
  0xbe   :  { %v533_v62 = vmul.f32 %v1218_v56, %v199_v59  ;;  %v532_v63 = vmul.f32 %v1217_v57, %v195_v61  ;;  %1524 = vrcp.f32 %v853_v20  ;;  %v1212_v59 = vld [vmem:[#allocation2] sm:$0xff]  }
  0xbf   :  { %1526 = vrcp.f32 %v840_v36  ;;  %1490 = vmatpush3.bf16.msra.mxu0 %v1406_v43 }
  0xc0   :  { %v601_v2 = vadd.f32 %v533_v62, %v532_v63  ;;  %v1314_v62 = vunpack.c.h.bf16 %v1395_v51  ;;  %v1313_v63 = vunpack.c.l.bf16 %v1395_v51  ;;  %1528 = vrcp.f32 %v846_v52  ;;  %1492 = vmatprep.subr.bf16.mxu0 %v1407_v60  ;;  %1512 = vmatpush3.bf16.msra.mxu1 %v1406_v43 }
  0xc1   :  { %v371_v3 = vpop.permute.xlu1 %370  ;;  %v206_v5 = vpop.permute.xlu0 %205  ;;  %1505 = vmatprep.subr.bf16.mxu1 %v1407_v60 }
  0xc2   :  { %v602_v6 = vrot.slane %v601_v2, 4  ;;  %v564_v17 = vmul.f32 %v1281_v7, %v371_v3  ;;  %v534_v23 = vmul.f32 %v1221_v11, %v206_v5  ;;  %v1850_v5 = vmax.f32 %v1833_v54, 1.0 }
  0xc3   :  { %v1213_v7 = vunpack.c.l.bf16 %v1212_v59  ;;  %1494 = vmatpush3.bf16.msra.mxu0 %v1407_v60 }
  0xc4   :  { %v603_v10 = vadd.f32 %v602_v6, %v601_v2  ;;  %v1523_v34 = vpop.eup %1522  ;;  %v854_v6 = vrot.slane %v1839_v9, 2  ;;  %1496 = vmatprep.subr.bf16.mxu0 %v1408_v14  ;;  %1513 = vmatpush3.bf16.msra.mxu1 %v1407_v60 }
  0xc5   :  { %v375_v13 = vpop.permute.xlu1 %374  ;;  %v283_v15 = vpop.permute.xlu0 %282  ;;  %1506 = vmatprep.subr.bf16.mxu1 %v1408_v14 }
  0xc6   :  { %v604_v16 = vrot.slane %v603_v10, 2  ;;  %v565_v18 = vmul.f32 %v1282_v8, %v375_v13  ;;  %v548_v41 = vmul.f32 %v1249_v24, %v283_v15  ;;  %v1373_v13 = vld [vmem:[#allocation2 + $0x18] sm:$0xff]   ;;  %1530 = vrcp.f32 %v854_v6 }
  0xc7   :  { %v860_v24 = vrot.slane %v1850_v5, 1  ;;  %v1225_v25 = vunpack.c.l.bf16 %v1373_v13  ;;  %v1226_v36 = vunpack.c.h.bf16 %v1373_v13  ;;  %1498 = vmatpush3.bf16.msra.mxu0 %v1408_v14 }
  0xc8   :  { %v605_v21 = vadd.f32 %v604_v16, %v603_v10  ;;  %v713_v22 = vadd.f32 %v565_v18, %v564_v17  ;;  %v1525_v15 = vpop.eup %1524  ;;  %v1214_v18 = vunpack.c.h.bf16 %v1212_v59  ;;  %1514 = vmatpush3.bf16.msra.mxu1 %v1408_v14  ;;  %v1277_v59 = vunpack.c.l.bf16 %v1858_v42 }
  0xc9   :  { %v210_v27 = vpop.permute.xlu1 %209  ;;  %v382_v28 = vpop.permute.xlu0 %381  ;;  %1532 = vrcp.f32 %v860_v24 }
  0xca   :  { %v606_v29 = vrot.slane %v605_v21, 1  ;;  %v714_v30 = vrot.slane %v713_v22, 4  ;;  %v535_v31 = vmul.f32 %v1222_v19, %v210_v27  ;;  %v566_v58 = vmul.f32 %v1285_v37, %v382_v28 }
  0xcb   :  { %1534 = vrcp.f32 %v1831_v53 }
  0xcc   :  { %v607_v38 = vadd.f32 %v606_v29, %v605_v21  ;;  %v715_v39 = vadd.f32 %v714_v30, %v713_v22  ;;  %v608_v40 = vadd.f32 %v535_v31, %v534_v23  ;;  %v1380_v30 = vld [vmem:[#allocation2 + $0x50] sm:$0xff]   ;;  %v1527_v31 = vpop.eup %1526 }
  0xcd   :  { %v287_v44 = vpop.permute.xlu1 %286  ;;  %v459_v46 = vpop.permute.xlu0 %458 }
  0xce   :  { %v1846_v47 = vmul.f32 %v1523_v34, %v607_v38  ;;  %v716_v48 = vrot.slane %v715_v39, 2  ;;  %v609_v49 = vrot.slane %v608_v40, 4  ;;  %v549_v50 = vmul.f32 %v1250_v32, %v287_v44  ;;  %v1529_v51 = vpop.eup %1528 }
  0xcf   :  { %v580_v17 = vmul.f32 %v1313_v63, %v459_v46  ;;  %v1253_v44 = vunpack.c.l.bf16 %v1380_v30 }
  0xd0   :  { %v717_v55 = vadd.f32 %v716_v48, %v715_v39  ;;  %v610_v56 = vadd.f32 %v609_v49, %v608_v40  ;;  %v657_v57 = vadd.f32 %v549_v50, %v548_v41  ;;  %v1860_v50 = vld [vmem:[#allocation2 + $0x98] sm:$0xff]  }
  0xd1   :  { %v386_v61 = vpop.permute.xlu1 %385  ;;  %v184_v0 = vpop.permute.xlu0 %183  ;;  %v1289_v14 = vunpack.c.l.bf16 %v1860_v50 }
  0xd2   :  { %v718_v1 = vrot.slane %v717_v55, 1  ;;  %v611_v2 = vrot.slane %v610_v56, 2  ;;  %v658_v3 = vrot.slane %v657_v57, 4  ;;  %v567_v4 = vmul.f32 %v1286_v45, %v386_v61 }
  0xd3   :  { %v530_v29 = vmul.f32 %v1213_v7, %v184_v0  ;;  %v1866_v0 = vld [vmem:[#allocation2 + $0xd0] sm:$0xff]  }
  0xd4   :  { %v719_v8 = vadd.f32 %v718_v1, %v717_v55  ;;  %v612_v10 = vadd.f32 %v611_v2, %v610_v56  ;;  %v659_v11 = vadd.f32 %v658_v3, %v657_v57  ;;  %v720_v12 = vadd.f32 %v567_v4, %v566_v58 }
  0xd5   :  { %v463_v16 = vpop.permute.xlu1 %462  ;;  %v217_v19 = vpop.permute.xlu0 %216  ;;  %v1254_v56 = vunpack.c.h.bf16 %v1380_v30  ;;  %v1278_v57 = vunpack.c.h.bf16 %v1858_v42  ;;  %v841_v2 = vrot.slane %v1831_v53, 3  ;;  %v1290_v3 = vunpack.c.h.bf16 %v1860_v50 }
  0xd6   :  { %v1853_v54 = vmul.f32 %v1525_v15, %v719_v8  ;;  %v613_v20 = vrot.slane %v612_v10, 1  ;;  %v660_v21 = vrot.slane %v659_v11, 2  ;;  %v721_v22 = vrot.slane %v720_v12, 4 }
  0xd7   :  { %v581_v23 = vmul.f32 %v1314_v62, %v463_v16  ;;  %v536_v49 = vmul.f32 %v1225_v25, %v217_v19  ;;  %v1318_v15 = vunpack.c.h.bf16 %v1866_v0  ;;  %1536 = vrcp.f32 %v841_v2 }
  0xd8   :  { %v614_v26 = vadd.f32 %v613_v20, %v612_v10  ;;  %v661_v27 = vadd.f32 %v660_v21, %v659_v11  ;;  %v722_v28 = vadd.f32 %v721_v22, %v720_v12  ;;  %v1531_v10 = vpop.eup %1530  ;;  %v1875_v20 = vld [vmem:[#allocation2 + $0x20] sm:$0xff]   ;;  %v1317_v24 = vunpack.c.l.bf16 %v1866_v0 }
  0xd9   :  { %v769_v32 = vadd.f32 %v581_v23, %v580_v17  ;;  %v188_v34 = vpop.permute.xlu1 %187  ;;  %v294_v37 = vpop.permute.xlu0 %293  ;;  %v1877_v21 = vld [vmem:[#allocation2 + $0x40] sm:$0xff]   ;;  %v847_v23 = vrot.slane %v1843_v35, 2 }
  0xda   :  { %v1856_v38 = vmul.f32 %v1527_v31, %v614_v26  ;;  %v662_v39 = vrot.slane %v661_v27, 1  ;;  %v723_v40 = vrot.slane %v722_v28, 2  ;;  %v531_v41 = vmul.f32 %v1214_v18, %v188_v34  ;;  %v1533_v30 = vpop.eup %1532 }
  0xdb   :  { %v770_v43 = vrot.slane %v769_v32, 4  ;;  %v550_v8 = vmul.f32 %v1253_v44, %v294_v37  ;;  %v1229_v37 = vunpack.c.l.bf16 %v1875_v20  ;;  %1538 = vrcp.f32 %v847_v23  ;;  %v1899_v23 = vld [vmem:[#allocation2 + $0xa0] sm:$0xff]  }
  0xdc   :  { %v663_v45 = vadd.f32 %v662_v39, %v661_v27  ;;  %v724_v46 = vadd.f32 %v723_v40, %v722_v28  ;;  %v594_v48 = vadd.f32 %v531_v41, %v530_v29  ;;  %v1881_v29 = vld [vmem:[#allocation2 + $0x58] sm:$0xff]   ;;  %v1246_v39 = vunpack.c.h.bf16 %v1877_v21 }
  0xdd   :  { %v771_v52 = vadd.f32 %v770_v43, %v769_v32  ;;  %v221_v55 = vpop.permute.xlu1 %220  ;;  %v360_v58 = vpop.permute.xlu0 %359  ;;  %v1036_v2 = vrot.slane %v1856_v38, 6  ;;  %1540 = vrcp.f32 %v1839_v9  ;;  %v1294_v0 = vunpack.c.h.bf16 %v1899_v23 }
  0xde   :  { %v1864_v60 = vmul.f32 %v1529_v51, %v663_v45  ;;  %v725_v61 = vrot.slane %v724_v46, 1  ;;  %v595_v62 = vrot.slane %v594_v48, 4  ;;  %v537_v63 = vmul.f32 %v1226_v36, %v221_v55 }
  0xdf   :  { %v772_v1 = vrot.slane %v771_v52, 2  ;;  %v562_v28 = vmul.f32 %v1277_v59, %v360_v58  ;;  %v1230_v36 = vunpack.c.h.bf16 %v1875_v20  ;;  %v1245_v45 = vunpack.c.l.bf16 %v1877_v21 }
  0xe0   :  { %v726_v4 = vadd.f32 %v725_v61, %v724_v46  ;;  %v596_v6 = vadd.f32 %v595_v62, %v594_v48  ;;  %v615_v7 = vadd.f32 %v537_v63, %v536_v49  ;;  %v1258_v46 = vunpack.c.h.bf16 %v1881_v29 }
  0xe1   :  { %v773_v11 = vadd.f32 %v772_v1, %v771_v52  ;;  %v298_v12 = vpop.permute.xlu1 %297  ;;  %v393_v13 = vpop.permute.xlu0 %392  ;;  %v1033_v55 = vrot.slane %v1846_v47, 7  ;;  %v855_v58 = vrot.slane %v1839_v9, 3 }
  0xe2   :  { %v1873_v16 = vmul.f32 %v1531_v10, %v726_v4  ;;  %v597_v17 = vrot.slane %v596_v6, 2  ;;  %v616_v18 = vrot.slane %v615_v7, 4  ;;  %v551_v19 = vmul.f32 %v1254_v56, %v298_v12  ;;  %v1535_v52 = vpop.eup %1534 }
  0xe3   :  { %v774_v22 = vrot.slane %v773_v11, 1  ;;  %v568_v59 = vmul.f32 %v1289_v14, %v393_v13  ;;  %1542 = vrcp.f32 %v855_v58 }
  0xe4   :  { %v598_v25 = vadd.f32 %v597_v17, %v596_v6  ;;  %v617_v26 = vadd.f32 %v616_v18, %v615_v7  ;;  %v664_v27 = vadd.f32 %v551_v19, %v550_v8  ;;  %v1257_v17 = vunpack.c.l.bf16 %v1881_v29 }
  0xe5   :  { %v775_v31 = vadd.f32 %v774_v22, %v773_v11  ;;  %v364_v32 = vpop.permute.xlu1 %363  ;;  %v470_v34 = vpop.permute.xlu0 %469 }
  0xe6   :  { %v599_v40 = vrot.slane %v598_v25, 1  ;;  %v618_v41 = vrot.slane %v617_v26, 2  ;;  %v665_v42 = vrot.slane %v664_v27, 4  ;;  %v563_v43 = vmul.f32 %v1278_v57, %v364_v32  ;;  %v1537_v11 = vpop.eup %1536 }
  0xe7   :  { %v1886_v44 = vmul.f32 %v1533_v30, %v775_v31  ;;  %v582_v6 = vmul.f32 %v1317_v24, %v470_v34  ;;  %v1901_v24 = vld [vmem:[#allocation2 + $0xc0] sm:$0xff]   ;;  %v1539_v34 = vpop.eup %1538 }
  0xe8   :  { %v600_v48 = vadd.f32 %v599_v40, %v598_v25  ;;  %v619_v49 = vadd.f32 %v618_v41, %v617_v26  ;;  %v666_v50 = vadd.f32 %v665_v42, %v664_v27  ;;  %v706_v51 = vadd.f32 %v563_v43, %v562_v28 }
  0xe9   :  { %v397_v56 = vpop.permute.xlu1 %396  ;;  %v228_v61 = vpop.permute.xlu0 %227  ;;  %v861_v26 = vrot.slane %v1850_v5, 2  ;;  %v1310_v43 = vunpack.c.h.bf16 %v1901_v24 }
  0xea   :  { %v900_v57 = vmul.f32 %v1535_v52, %v600_v48  ;;  %v620_v62 = vrot.slane %v619_v49, 1  ;;  %v667_v63 = vrot.slane %v666_v50, 2  ;;  %v707_v1 = vrot.slane %v706_v51, 4 }
  0xeb   :  { %v569_v4 = vmul.f32 %v1290_v3, %v397_v56  ;;  %v538_v27 = vmul.f32 %v1229_v37, %v228_v61  ;;  %1544 = vrcp.f32 %v861_v26 }
  0xec   :  { %v621_v7 = vadd.f32 %v620_v62, %v619_v49  ;;  %v668_v8 = vadd.f32 %v667_v63, %v666_v50  ;;  %v708_v10 = vadd.f32 %v707_v1, %v706_v51  ;;  %v1035_v47 = vsel %vm1034_vm1, %v1033_v55, %v900_v57  ;;  %v1911_v51 = vld [vmem:[#allocation2 + $0xd8] sm:$0xff]   ;;  %v1541_v62 = vpop.eup %1540 }
  0xed   :  { %v727_v12 = vadd.f32 %v569_v4, %v568_v59  ;;  %v474_v13 = vpop.permute.xlu1 %473  ;;  %v272_v14 = vpop.permute.xlu0 %271  ;;  %v1038_v18 = vsel %vm1037_vm2, %v1036_v2, %v1035_v47  ;;  %v842_v55 = vrot.slane %v1831_v53, 4  ;;  %v1068_v63 = vrot.slane %v1853_v54, 7  ;;  %v1924_v47 = vld [vmem:[#allocation2 + $0x28] sm:$0xff]  }
  0xee   :  { %v906_v19 = vmul.f32 %v1537_v11, %v621_v7  ;;  %v669_v38 = vrot.slane %v668_v8, 1  ;;  %v709_v22 = vrot.slane %v708_v10, 2  ;;  %v583_v3 = vmul.f32 %v1318_v15, %v474_v13 }
  0xef   :  { %v728_v25 = vrot.slane %v727_v12, 4  ;;  %v1293_v15 = vunpack.c.l.bf16 %v1899_v23  ;;  %v546_v57 = vmul.f32 %v1245_v45, %v272_v14  ;;  %v1309_v2 = vunpack.c.l.bf16 %v1901_v24 }
  0xf0   :  { %v1039_v28 = vrot.slane %v906_v19, 5  ;;  %v670_v30 = vadd.f32 %v669_v38, %v668_v8  ;;  %v710_v31 = vadd.f32 %v709_v22, %v708_v10  ;;  %v776_v32 = vadd.f32 %v583_v3, %v582_v6  ;;  %v1543_v19 = vpop.eup %1542 }
  0xf1   :  { %v729_v40 = vadd.f32 %v728_v25, %v727_v12  ;;  %v232_v41 = vpop.permute.xlu1 %231  ;;  %v305_v42 = vpop.permute.xlu0 %304  ;;  %v1322_v4 = vunpack.c.h.bf16 %v1911_v51  ;;  %v1070_v45 = vrot.slane %v1873_v16, 6  ;;  %1546 = vrcp.f32 %v842_v55 }
  0xf2   :  { %v1907_v48 = vmul.f32 %v1539_v34, %v670_v30  ;;  %v711_v49 = vrot.slane %v710_v31, 1  ;;  %v777_v50 = vrot.slane %v776_v32, 4  ;;  %v539_v37 = vmul.f32 %v1230_v36, %v232_v41 }
  0xf3   :  { %v730_v52 = vrot.slane %v729_v40, 2  ;;  %v1915_v56 = vsel %vm1040_vm3, %v1039_v28, %v1038_v18  ;;  %v552_v54 = vmul.f32 %v1257_v17, %v305_v42  ;;  %v1321_v25 = vunpack.c.l.bf16 %v1911_v51  ;;  %v1933_v28 = vld [vmem:[#allocation2 + $0x60] sm:$0xff]  }
  0xf4   :  { %v712_v58 = vadd.f32 %v711_v49, %v710_v31  ;;  %v778_v59 = vadd.f32 %v777_v50, %v776_v32  ;;  %v622_v61 = vadd.f32 %v539_v37, %v538_v27  ;;  %v1234_v21 = vunpack.c.h.bf16 %v1924_v47 }
  0xf5   :  { %v731_v20 = vadd.f32 %v730_v52, %v729_v40  ;;  %v276_v36 = vpop.permute.xlu1 %275  ;;  %v404_v1 = vpop.permute.xlu0 %403  ;;  %1548 = vrcp.f32 %v1843_v35  ;;  %v848_v31 = vrot.slane %v1843_v35, 3  ;;  %v1233_v32 = vunpack.c.l.bf16 %v1924_v47 }
  0xf6   :  { %v932_v6 = vmul.f32 %v1541_v62, %v712_v58  ;;  %v779_v7 = vrot.slane %v778_v59, 2  ;;  %v623_v8 = vrot.slane %v622_v61, 4  ;;  %v547_v10 = vmul.f32 %v1246_v39, %v276_v36  ;;  %v1545_v49 = vpop.eup %1544  ;;  %v1942_v62 = vld [vmem:[#allocation2 + $0xa8] sm:$0xff]  }
  0xf7   :  { %v732_v11 = vrot.slane %v731_v20, 1  ;;  %v570_v52 = vmul.f32 %v1293_v15, %v404_v1  ;;  %v1262_v29 = vunpack.c.h.bf16 %v1933_v28  ;;  %1550 = vrcp.f32 %v848_v31 }
  0xf8   :  { %v780_v12 = vadd.f32 %v779_v7, %v778_v59  ;;  %v624_v13 = vadd.f32 %v623_v8, %v622_v61  ;;  %v650_v14 = vadd.f32 %v547_v10, %v546_v57  ;;  %v1069_v18 = vsel %vm1034_vm1, %v1068_v63, %v932_v6  ;;  %v1950_v8 = vld [vmem:[#allocation2 + $0xe0] sm:$0xff]  }
  0xf9   :  { %v733_v38 = vadd.f32 %v732_v11, %v731_v20  ;;  %v309_v22 = vpop.permute.xlu1 %308  ;;  %v448_v3 = vpop.permute.xlu0 %447  ;;  %v1071_v39 = vsel %vm1037_vm2, %v1070_v45, %v1069_v18  ;;  %v856_v20 = vrot.slane %v1839_v9, 4  ;;  %v1297_v23 = vunpack.c.l.bf16 %v1942_v62 }
  0xfa   :  { %v781_v26 = vrot.slane %v780_v12, 1  ;;  %v625_v16 = vrot.slane %v624_v13, 2  ;;  %v651_v27 = vrot.slane %v650_v14, 4  ;;  %v553_v17 = vmul.f32 %v1258_v46, %v309_v22 }
  0xfb   :  { %v938_v30 = vmul.f32 %v1543_v19, %v733_v38  ;;  %v1261_v46 = vunpack.c.l.bf16 %v1933_v28  ;;  %v578_v7 = vmul.f32 %v1309_v2, %v448_v3  ;;  %v1547_v10 = vpop.eup %1546  ;;  %1552 = vrcp.f32 %v856_v20 }
  0xfc   :  { %v782_v34 = vadd.f32 %v781_v26, %v780_v12  ;;  %v626_v40 = vadd.f32 %v625_v16, %v624_v13  ;;  %v652_v41 = vadd.f32 %v651_v27, %v650_v14  ;;  %v671_v42 = vadd.f32 %v553_v17, %v552_v54 }
  0xfd   :  { %v1072_v50 = vrot.slane %v938_v30, 5  ;;  %v408_v37 = vpop.permute.xlu1 %407  ;;  %v481_v55 = vpop.permute.xlu0 %480  ;;  %v1298_v12 = vunpack.c.h.bf16 %v1942_v62  ;;  %v1326_v38 = vunpack.c.h.bf16 %v1950_v8  ;;  %v1054_v27 = vrot.slane %v1864_v60, 7 }
  0xfe   :  { %v1940_v58 = vmul.f32 %v1545_v49, %v782_v34  ;;  %v627_v59 = vrot.slane %v626_v40, 1  ;;  %v653_v61 = vrot.slane %v652_v41, 2  ;;  %v672_v57 = vrot.slane %v671_v42, 4 }
  0xff   :  { %v571_v63 = vmul.f32 %v1294_v0, %v408_v37  ;;  %v1948_v15 = vsel %vm1040_vm3, %v1072_v50, %v1071_v39  ;;  %v584_v2 = vmul.f32 %v1321_v25, %v481_v55  ;;  %v1549_v16 = vpop.eup %1548  ;;  %1554 = vrcp.f32 %v1850_v5 }
 0x100   :  { %v628_v36 = vadd.f32 %v627_v59, %v626_v40  ;;  %v654_v1 = vadd.f32 %v653_v61, %v652_v41  ;;  %v673_v6 = vadd.f32 %v672_v57, %v671_v42  ;;  %v862_v31 = vrot.slane %v1850_v5, 3  ;;  %v1962_v41 = vld [vmem:[#allocation2 + $0x30] sm:$0xff]  }
 0x101   :  { %v734_v45 = vadd.f32 %v571_v63, %v570_v52  ;;  %v452_v11 = vpop.permute.xlu1 %451  ;;  %v239_v54 = vpop.permute.xlu0 %238  ;;  %v1056_v42 = vrot.slane %v1907_v48, 6  ;;  %v1238_v20 = vunpack.c.h.bf16 %v1962_v41 }
 0x102   :  { %v908_v0 = vmul.f32 %v1547_v10, %v628_v36  ;;  %v655_v13 = vrot.slane %v654_v1, 1  ;;  %v674_v14 = vrot.slane %v673_v6, 2  ;;  %v579_v18 = vmul.f32 %v1310_v43, %v452_v11  ;;  %v1551_v61 = vpop.eup %1550 }
 0x103   :  { %v735_v19 = vrot.slane %v734_v45, 4  ;;  %v540_v50 = vmul.f32 %v1233_v32, %v239_v54  ;;  %1556 = vrcp.f32 %v862_v31 }
 0x104   :  { %v656_v22 = vadd.f32 %v655_v13, %v654_v1  ;;  %v675_v3 = vadd.f32 %v674_v14, %v673_v6  ;;  %v762_v39 = vadd.f32 %v579_v18, %v578_v7  ;;  %v1042_v26 = vrot.slane %v908_v0, 4  ;;  %v1975_v6 = vld [vmem:[#allocation2 + $0x68] sm:$0xff]  }
 0x105   :  { %v736_v17 = vadd.f32 %v735_v19, %v734_v45  ;;  %v485_v30 = vpop.permute.xlu1 %484  ;;  %v316_v24 = vpop.permute.xlu0 %315  ;;  %v843_v45 = vrot.slane %v1831_v53, 5 }
 0x106   :  { %v916_v43 = vmul.f32 %v1549_v16, %v656_v22  ;;  %v676_v34 = vrot.slane %v675_v3, 1  ;;  %v763_v40 = vrot.slane %v762_v39, 4  ;;  %v585_v25 = vmul.f32 %v1322_v4, %v485_v30  ;;  %v1553_v14 = vpop.eup %1552 }
 0x107   :  { %v737_v49 = vrot.slane %v736_v17, 2  ;;  %v1967_v60 = vsel %vm1043_vm4, %v1042_v26, %v1915_v56  ;;  %v1325_v4 = vunpack.c.l.bf16 %v1950_v8  ;;  %v554_v10 = vmul.f32 %v1261_v46, %v316_v24 }
 0x108   :  { %v1055_v37 = vsel %vm1034_vm1, %v1054_v27, %v916_v43  ;;  %v677_v52 = vadd.f32 %v676_v34, %v675_v3  ;;  %v764_v55 = vadd.f32 %v763_v40, %v762_v39  ;;  %v783_v59 = vadd.f32 %v585_v25, %v584_v2 }
 0x109   :  { %v738_v57 = vadd.f32 %v737_v49, %v736_v17  ;;  %v243_v63 = vpop.permute.xlu1 %242  ;;  %v415_v51 = vpop.permute.xlu0 %414  ;;  %v1057_v48 = vsel %vm1037_vm2, %v1056_v42, %v1055_v37  ;;  %v849_v2 = vrot.slane %v1843_v35, 4  ;;  %v1266_v22 = vunpack.c.h.bf16 %v1975_v6 }
 0x10a   :  { %v922_v32 = vmul.f32 %v1551_v61, %v677_v52  ;;  %v765_v36 = vrot.slane %v764_v55, 2  ;;  %v784_v1 = vrot.slane %v783_v59, 4  ;;  %v541_v56 = vmul.f32 %v1234_v21, %v243_v63  ;;  %v1555_v16 = vpop.eup %1554 }
 0x10b   :  { %v739_v7 = vrot.slane %v738_v57, 1  ;;  %v1237_v21 = vunpack.c.l.bf16 %v1962_v41  ;;  %1558 = vrcp.f32 %v843_v45  ;;  %v857_v17 = vrot.slane %v1839_v9, 5  ;;  %v2007_v45 = vld [vmem:[#allocation2 + $0xe8] sm:$0xff]  }
 0x10c   :  { %v1058_v11 = vrot.slane %v922_v32, 5  ;;  %v766_v54 = vadd.f32 %v765_v36, %v764_v55  ;;  %v785_v0 = vadd.f32 %v784_v1, %v783_v59  ;;  %v629_v13 = vadd.f32 %v541_v56, %v540_v50  ;;  %v1992_v55 = vld [vmem:[#allocation2 + $0xb0] sm:$0xff]  }
 0x10d   :  { %v740_v18 = vadd.f32 %v739_v7, %v738_v57  ;;  %v320_v19 = vpop.permute.xlu1 %319  ;;  %v492_v47 = vpop.permute.xlu0 %491  ;;  %v1082_v40 = vrot.slane %v1886_v44, 7  ;;  %1560 = vrcp.f32 %v849_v2  ;;  %v572_v28 = vmul.f32 %v1297_v23, %v415_v51 }
 0x10e   :  { %v767_v3 = vrot.slane %v766_v54, 1  ;;  %v786_v39 = vrot.slane %v785_v0, 2  ;;  %v630_v26 = vrot.slane %v629_v13, 4  ;;  %v555_v46 = vmul.f32 %v1262_v29, %v320_v19  ;;  %v1557_v32 = vpop.eup %1556 }
 0x10f   :  { %v940_v27 = vmul.f32 %v1553_v14, %v740_v18  ;;  %v1987_v30 = vsel %vm1040_vm3, %v1058_v11, %v1057_v48  ;;  %v1084_v59 = vrot.slane %v1940_v58, 6  ;;  %v586_v57 = vmul.f32 %v1325_v4, %v492_v47 }
 0x110   :  { %v768_v31 = vadd.f32 %v767_v3, %v766_v54  ;;  %v787_v24 = vadd.f32 %v786_v39, %v785_v0  ;;  %v631_v43 = vadd.f32 %v630_v26, %v629_v13  ;;  %v678_v34 = vadd.f32 %v555_v46, %v554_v10 }
 0x111   :  { %v419_v25 = vpop.permute.xlu1 %418  ;;  %v250_v29 = vpop.permute.xlu0 %249  ;;  %v1074_v42 = vrot.slane %v940_v27, 4  ;;  %v1265_v7 = vunpack.c.l.bf16 %v1975_v6  ;;  %v1302_v58 = vunpack.c.h.bf16 %v1992_v55  ;;  %v863_v54 = vrot.slane %v1850_v5, 4 }
 0x112   :  { %v948_v49 = vmul.f32 %v1555_v16, %v768_v31  ;;  %v788_v50 = vrot.slane %v787_v24, 1  ;;  %v632_v37 = vrot.slane %v631_v43, 2  ;;  %v679_v52 = vrot.slane %v678_v34, 4 }
 0x113   :  { %v573_v61 = vmul.f32 %v1298_v12, %v419_v25  ;;  %v1999_v44 = vsel %vm1043_vm4, %v1074_v42, %v1948_v15  ;;  %v542_v0 = vmul.f32 %v1237_v21, %v250_v29  ;;  %1562 = vrcp.f32 %v857_v17 }
 0x114   :  { %v1083_v23 = vsel %vm1034_vm1, %v1082_v40, %v948_v49  ;;  %v789_v63 = vadd.f32 %v788_v50, %v787_v24  ;;  %v633_v51 = vadd.f32 %v632_v37, %v631_v43  ;;  %v680_v48 = vadd.f32 %v679_v52, %v678_v34 }
 0x115   :  { %v741_v36 = vadd.f32 %v573_v61, %v572_v28  ;;  %v496_v1 = vpop.permute.xlu1 %495  ;;  %v327_v56 = vpop.permute.xlu0 %326  ;;  %v1085_v62 = vsel %vm1037_vm2, %v1084_v59, %v1083_v23  ;;  %v1301_v26 = vunpack.c.l.bf16 %v1992_v55  ;;  %v1330_v8 = vunpack.c.h.bf16 %v2007_v45  ;;  %v1377_v61 = vld [vmem:[#allocation2 + $0x38] sm:$0xff]  }
 0x116   :  { %v954_v12 = vmul.f32 %v1557_v32, %v789_v63  ;;  %v634_v4 = vrot.slane %v633_v51, 1  ;;  %v681_v10 = vrot.slane %v680_v48, 2  ;;  %v587_v15 = vmul.f32 %v1326_v38, %v496_v1  ;;  %v1559_v2 = vpop.eup %1558 }
 0x117   :  { %v742_v11 = vrot.slane %v741_v36, 4  ;;  %v844_v21 = vrot.slane %v1831_v53, 6  ;;  %v1561_v27 = vpop.eup %1560  ;;  %1564 = vrcp.f32 %v863_v54  ;;  %v556_v25 = vmul.f32 %v1265_v7, %v327_v56 }
 0x118   :  { %v1086_v13 = vrot.slane %v954_v12, 5  ;;  %v635_v14 = vadd.f32 %v634_v4, %v633_v51  ;;  %v682_v18 = vadd.f32 %v681_v10, %v680_v48  ;;  %v790_v19 = vadd.f32 %v587_v15, %v586_v57 }
 0x119   :  { %v743_v47 = vadd.f32 %v742_v11, %v741_v36  ;;  %v254_v3 = vpop.permute.xlu1 %253  ;;  %v426_v39 = vpop.permute.xlu0 %425  ;;  %v850_v42 = vrot.slane %v1843_v35, 5  ;;  %v1329_v41 = vunpack.c.l.bf16 %v2007_v45  ;;  %1566 = vrcp.f32 %v844_v21 }
 0x11a   :  { %v683_v38 = vrot.slane %v682_v18, 1  ;;  %v791_v46 = vrot.slane %v790_v19, 4  ;;  %v543_v16 = vmul.f32 %v1238_v20, %v254_v3  ;;  %v910_v31 = vmul.f32 %v1559_v2, %v635_v14 }
 0x11b   :  { %v744_v17 = vrot.slane %v743_v47, 2  ;;  %v2016_v24 = vsel %vm1040_vm3, %v1086_v13, %v1085_v62  ;;  %v574_v23 = vmul.f32 %v1301_v26, %v426_v39  ;;  %v864_v62 = vrot.slane %v1850_v5, 5 }
 0x11c   :  { %v684_v43 = vadd.f32 %v683_v38, %v682_v18  ;;  %v792_v34 = vadd.f32 %v791_v46, %v790_v19  ;;  %v636_v40 = vadd.f32 %v543_v16, %v542_v0  ;;  %v1045_v20 = vrot.slane %v910_v31, 3 }
 0x11d   :  { %v745_v28 = vadd.f32 %v744_v17, %v743_v47  ;;  %v331_v29 = vpop.permute.xlu1 %330  ;;  %v503_v49 = vpop.permute.xlu0 %502  ;;  %v1242_v12 = vunpack.c.h.bf16 %v1377_v61  ;;  %1568 = vrcp.f32 %v850_v42  ;;  %v858_v54 = vrot.slane %v1839_v9, 6  ;;  %v1393_v17 = vld [vmem:[#allocation2 + $0xb8] sm:$0xff]  }
 0x11e   :  { %v924_v50 = vmul.f32 %v1561_v27, %v684_v43  ;;  %v793_v37 = vrot.slane %v792_v34, 2  ;;  %v637_v52 = vrot.slane %v636_v40, 4  ;;  %v557_v59 = vmul.f32 %v1266_v22, %v331_v29  ;;  %v1563_v1 = vpop.eup %1562 }
 0x11f   :  { %v746_v57 = vrot.slane %v745_v28, 1  ;;  %v2024_v63 = vsel %vm1046_vm5, %v1045_v20, %v1967_v60  ;;  %v1241_v22 = vunpack.c.l.bf16 %v1377_v61  ;;  %v1384_v60 = vld [vmem:[#allocation2 + $0x70] sm:$0xff]   ;;  %v588_v39 = vmul.f32 %v1329_v41, %v503_v49 }
 0x120   :  { %v1060_v51 = vrot.slane %v924_v50, 4  ;;  %v794_v48 = vadd.f32 %v793_v37, %v792_v34  ;;  %v638_v32 = vadd.f32 %v637_v52, %v636_v40  ;;  %v685_v36 = vadd.f32 %v557_v59, %v556_v25  ;;  %v1400_v59 = vld [vmem:[#allocation2 + $0xf0] sm:$0xff]  }
 0x121   :  { %v747_v56 = vadd.f32 %v746_v57, %v745_v28  ;;  %v430_v7 = vpop.permute.xlu1 %429  ;;  %v261_v6 = vpop.permute.xlu0 %260  ;;  %v1270_v26 = vunpack.c.h.bf16 %v1384_v60  ;;  %v1269_v55 = vunpack.c.l.bf16 %v1384_v60  ;;  %1570 = vrcp.f32 %v858_v54 }
 0x122   :  { %v795_v4 = vrot.slane %v794_v48, 1  ;;  %v639_v10 = vrot.slane %v638_v32, 2  ;;  %v686_v15 = vrot.slane %v685_v36, 4  ;;  %v575_v11 = vmul.f32 %v1302_v58, %v430_v7  ;;  %v1565_v47 = vpop.eup %1564 }
 0x123   :  { %v942_v0 = vmul.f32 %v1563_v1, %v747_v56  ;;  %v2032_v13 = vsel %vm1043_vm4, %v1060_v51, %v1987_v30  ;;  %v544_v31 = vmul.f32 %v1241_v22, %v261_v6  ;;  %v1567_v29 = vpop.eup %1566  ;;  %v1306_v41 = vunpack.c.h.bf16 %v1393_v17 }
 0x124   :  { %v796_v14 = vadd.f32 %v795_v4, %v794_v48  ;;  %v640_v18 = vadd.f32 %v639_v10, %v638_v32  ;;  %v687_v19 = vadd.f32 %v686_v15, %v685_v36  ;;  %v748_v2 = vadd.f32 %v575_v11, %v574_v23  ;;  %v1385_v15 = vld [vmem:[#allocation2 + $0x78] sm:$0xff]  }
 0x125   :  { %v507_v3 = vpop.permute.xlu1 %506  ;;  %v338_v38 = vpop.permute.xlu0 %337  ;;  %v1076_v58 = vrot.slane %v942_v0, 3  ;;  %v1305_v50 = vunpack.c.l.bf16 %v1393_v17  ;;  %v845_v37 = vrot.slane %v1831_v53, 7  ;;  %1572 = vrcp.f32 %v864_v62 }
 0x126   :  { %v956_v46 = vmul.f32 %v1565_v47, %v796_v14  ;;  %v641_v16 = vrot.slane %v640_v18, 1  ;;  %v688_v21 = vrot.slane %v687_v19, 2  ;;  %v749_v27 = vrot.slane %v748_v2, 4 }
 0x127   :  { %v589_v30 = vmul.f32 %v1330_v8, %v507_v3  ;;  %v2038_v43 = vsel %vm1046_vm5, %v1076_v58, %v1999_v44  ;;  %v558_v32 = vmul.f32 %v1269_v55, %v338_v38  ;;  %v1569_v36 = vpop.eup %1568  ;;  %v1333_v7 = vunpack.c.l.bf16 %v1400_v59 }
 0x128   :  { %v1088_v34 = vrot.slane %v956_v46, 4  ;;  %v642_v40 = vadd.f32 %v641_v16, %v640_v18  ;;  %v689_v25 = vadd.f32 %v688_v21, %v687_v19  ;;  %v750_v28 = vadd.f32 %v749_v27, %v748_v2  ;;  %v1401_v16 = vld [vmem:[#allocation2 + $0xf8] sm:$0xff]  }
 0x129   :  { %v797_v42 = vadd.f32 %v589_v30, %v588_v39  ;;  %v265_v49 = vpop.permute.xlu1 %264  ;;  %v437_v20 = vpop.permute.xlu0 %436  ;;  %1574 = vrcp.f32 %v845_v37  ;;  %v1334_v3 = vunpack.c.h.bf16 %v1400_v59  ;;  %v1274_v39 = vunpack.c.h.bf16 %v1385_v15 }
 0x12a   :  { %v690_v45 = vrot.slane %v689_v25, 1  ;;  %v751_v8 = vrot.slane %v750_v28, 2  ;;  %v545_v52 = vmul.f32 %v1242_v12, %v265_v49  ;;  %v912_v61 = vmul.f32 %v1567_v29, %v642_v40 }
 0x12b   :  { %v798_v44 = vrot.slane %v797_v42, 4  ;;  %v2043_v57 = vsel %vm1043_vm4, %v1088_v34, %v2016_v24  ;;  %v851_v12 = vrot.slane %v1843_v35, 6  ;;  %v576_v24 = vmul.f32 %v1305_v50, %v437_v20  ;;  %v1571_v19 = vpop.eup %1570 }
 0x12c   :  { %v691_v23 = vadd.f32 %v690_v45, %v689_v25  ;;  %v752_v51 = vadd.f32 %v751_v8, %v750_v28  ;;  %v643_v48 = vadd.f32 %v545_v52, %v544_v31  ;;  %v1048_v6 = vrot.slane %v912_v61, 2 }
 0x12d   :  { %v799_v1 = vadd.f32 %v798_v44, %v797_v42  ;;  %v342_v56 = vpop.permute.xlu1 %341  ;;  %v514_v53 = vpop.permute.xlu0 %513  ;;  %v1273_v38 = vunpack.c.l.bf16 %v1385_v15  ;;  %v859_v21 = vrot.slane %v1839_v9, 7  ;;  %1576 = vrcp.f32 %v851_v12 }
 0x12e   :  { %v926_v22 = vmul.f32 %v1569_v36, %v691_v23  ;;  %v753_v62 = vrot.slane %v752_v51, 1  ;;  %v644_v4 = vrot.slane %v643_v48, 4  ;;  %v559_v10 = vmul.f32 %v1270_v26, %v342_v56 }
 0x12f   :  { %v800_v11 = vrot.slane %v799_v1, 2  ;;  %v2048_v60 = vsel %vm1049_vm6, %v1048_v6, %v2024_v63  ;;  %v590_v40 = vmul.f32 %v1333_v7, %v514_v53  ;;  %v1573_v25 = vpop.eup %1572  ;;  %v1337_v42 = vunpack.c.l.bf16 %v1401_v16 }
 0x130   :  { %v754_v54 = vadd.f32 %v753_v62, %v752_v51  ;;  %v645_v0 = vadd.f32 %v644_v4, %v643_v48  ;;  %v692_v14 = vadd.f32 %v559_v10, %v558_v32  ;;  %v1062_v18 = vrot.slane %v926_v22, 3 }
 0x131   :  { %v801_v2 = vadd.f32 %v800_v11, %v799_v1  ;;  %v441_v47 = vpop.permute.xlu1 %440  ;;  %v349_v46 = vpop.permute.xlu0 %348  ;;  %1578 = vrcp.f32 %v859_v21  ;;  %v1338_v32 = vunpack.c.h.bf16 %v1401_v16  ;;  %v852_v36 = vrot.slane %v1843_v35, 7 }
 0x132   :  { %v646_v55 = vrot.slane %v645_v0, 2  ;;  %v693_v26 = vrot.slane %v692_v14, 4  ;;  %v577_v58 = vmul.f32 %v1306_v41, %v441_v47  ;;  %v944_v63 = vmul.f32 %v1571_v19, %v754_v54 }
 0x133   :  { %v802_v27 = vrot.slane %v801_v2, 1  ;;  %v2053_v17 = vsel %vm1046_vm5, %v1062_v18, %v2032_v13  ;;  %v865_v41 = vrot.slane %v1850_v5, 6  ;;  %v560_v8 = vmul.f32 %v1273_v38, %v349_v46  ;;  %v1575_v51 = vpop.eup %1574 }
 0x134   :  { %v647_v30 = vadd.f32 %v646_v55, %v645_v0  ;;  %v694_v31 = vadd.f32 %v693_v26, %v692_v14  ;;  %v755_v34 = vadd.f32 %v577_v58, %v576_v24  ;;  %v1078_v49 = vrot.slane %v944_v63, 2 }
 0x135   :  { %v803_v28 = vadd.f32 %v802_v27, %v801_v2  ;;  %v518_v29 = vpop.permute.xlu1 %517  ;;  %v525_v61 = vpop.permute.xlu0 %524  ;;  %1580 = vrcp.f32 %v865_v41  ;;  %v866_v47 = vrot.slane %v1850_v5, 7 }
 0x136   :  { %v648_v20 = vrot.slane %v647_v30, 1  ;;  %v695_v9 = vrot.slane %v694_v31, 2  ;;  %v756_v50 = vrot.slane %v755_v34, 4  ;;  %v591_v37 = vmul.f32 %v1334_v3, %v518_v29 }
 0x137   :  { %v958_v45 = vmul.f32 %v1573_v25, %v803_v28  ;;  %v1079_v13 = vsel %vm1049_vm6, %v1078_v49, %v2038_v43  ;;  %v592_v12 = vmul.f32 %v1337_v42, %v525_v61  ;;  %v1577_v11 = vpop.eup %1576  ;;  %1582 = vrcp.f32 %v852_v36 }
 0x138   :  { %v696_v52 = vadd.f32 %v695_v9, %v694_v31  ;;  %v757_v59 = vadd.f32 %v756_v50, %v755_v34  ;;  %v804_v44 = vadd.f32 %v591_v37, %v590_v40  ;;  %v649_v23 = vadd.f32 %v648_v20, %v647_v30 }
 0x139   :  { %v353_v48 = vpop.permute.xlu1 %352  ;;  %v1090_v1 = vrot.slane %v958_v45, 3  ;;  %1584 = vrcp.f32 %v866_v47 }
 0x13a   :  { %v697_v56 = vrot.slane %v696_v52, 1  ;;  %v758_v53 = vrot.slane %v757_v59, 2  ;;  %v805_v7 = vrot.slane %v804_v44, 4  ;;  %v561_v6 = vmul.f32 %v1274_v39, %v353_v48 }
 0x13b   :  { %v914_v22 = vmul.f32 %v1575_v51, %v649_v23  ;;  %v1091_v43 = vsel %vm1046_vm5, %v1090_v1, %v2043_v57  ;;  %v1579_v55 = vpop.eup %1578 }
 0x13c   :  { %v698_v62 = vadd.f32 %v697_v56, %v696_v52  ;;  %v759_v4 = vadd.f32 %v758_v53, %v757_v59  ;;  %v806_v10 = vadd.f32 %v805_v7, %v804_v44  ;;  %v699_v15 = vadd.f32 %v561_v6, %v560_v8  ;;  %v995_v44 = vld [vmem:[%s2089_s3] sm:$0x1]  ;;  %s1198_s3 = sshll.u32 %s1670_s22, 4  ;;  %s1199_s3 = int_to_ptr.vmem [resolvable:$true] %s1198_s3 }
 0x13d   :  { %v529_v24 = vpop.permute.xlu1 %528  ;;  %v1051_v54 = vrot.slane %v914_v22, 1  ;;  %v996_v61 = vunpack.c.l.bf16 %v995_v44  ;;  %s1638_s23 = scalar_lea.vmem %s1199_s3, 512  ;;  %p1643_p3 = scmp.lt.s32.totalorder %s1199_s3, %s1199_s3 }
 0x13e   :  { %v760_v0 = vrot.slane %v759_v4, 1  ;;  %v807_v35 = vrot.slane %v806_v10, 2  ;;  %v700_v14 = vrot.slane %v699_v15, 4  ;;  %v593_v18 = vmul.f32 %v1338_v32, %v529_v24  ;;  %p1639_p2 = scmp.ne.s32.totalorder %s1199_s3, %s1638_s23  ;;  %p1644_p4 = scmp.lt.s32.totalorder %s1638_s23, %s1638_s23 }
 0x13f   :  { %v1053_v19 = vsel %vm1052_vm7, %v1051_v54, %v2048_v60  ;;  %v928_v2 = vmul.f32 %v1577_v11, %v698_v62  ;;  %v1581_v5 = vpop.eup %1580  ;;  %v1000_v23 = vrot.slane %v996_v61, %v1788_v33 }
 0x140   :  { %v808_v3 = vadd.f32 %v807_v35, %v806_v10  ;;  %v701_v57 = vadd.f32 %v700_v14, %v699_v15  ;;  %v811_v39 = vadd.f32 %v593_v18, %v592_v12  ;;  %1461 = vmatprep.mubr.f32.mxu0 %v1053_v19  ;;  %v761_v38 = vadd.f32 %v760_v0, %v759_v4  ;;  %p1645_p5 = por %p1644_p4, %p1643_p3 }
 0x141   :  { %v1064_v26 = vrot.slane %v928_v2, 2  ;;  %v1583_v41 = vpop.eup %1582 }
 0x142   :  { %v809_v58 = vrot.slane %v808_v3, 1  ;;  %v702_v46 = vrot.slane %v701_v57, 2  ;;  %v812_v16 = vrot.slane %v811_v39, 4  ;;  %v946_v21 = vmul.f32 %v1579_v55, %v761_v38  ;;  %p1646_p6 = pnand %p1645_p5, %p1639_p2 }
 0x143   :  { %v1065_v27 = vsel %vm1049_vm6, %v1064_v26, %v2053_v17  ;;  %v1585_v45 = vpop.eup %1584 }
 0x144   :  { %v810_v60 = vadd.f32 %v809_v58, %v808_v3  ;;  %v703_v63 = vadd.f32 %v702_v46, %v701_v57  ;;  %v813_v30 = vadd.f32 %v812_v16, %v811_v39  ;;  %v1080_v31 = vrot.slane %v946_v21, 1 }
 0x146   :  { %v704_v34 = vrot.slane %v703_v63, 1  ;;  %v814_v40 = vrot.slane %v813_v30, 2  ;;  %v1081_v25 = vsel %vm1052_vm7, %v1080_v31, %v1079_v13  ;;  %v960_v28 = vmul.f32 %v1581_v5, %v810_v60 }
 0x147   :  { %1464 = vmatprep.mubr.f32.mxu1 %v1081_v25 }
 0x148   :  { %v705_v29 = vadd.f32 %v704_v34, %v703_v63  ;;  %v815_v42 = vadd.f32 %v814_v40, %v813_v30  ;;  %v1092_v49 = vrot.slane %v960_v28, 2 }
 0x14a   :  { %v816_v20 = vrot.slane %v815_v42, 1  ;;  %v930_v9 = vmul.f32 %v1583_v41, %v705_v29  ;;  %v1093_v17 = vsel %vm1049_vm6, %v1092_v49, %v1091_v43 }
 0x14c   :  { %v817_v50 = vadd.f32 %v816_v20, %v815_v42  ;;  %v1066_v37 = vrot.slane %v930_v9, 1 }
 0x14e   :  { %v1067_v8 = vsel %vm1052_vm7, %v1066_v37, %v1065_v27  ;;  %v962_v52 = vmul.f32 %v1585_v45, %v817_v50 }
 0x14f   :  { %1462 = vmatmul.mubr.f32.vlgmr.msra.gmra.mrb[0].mxu0 %v1067_v8 }
 0x150   :  { %v1094_v59 = vrot.slane %v962_v52, 1 }
 0x152   :  { %v1095_v13 = vsel %vm1052_vm7, %v1094_v59, %v1093_v17 }
 0x153   :  { %1465 = vmatmul.mubr.f32.vlgmr.msra.gmra.mrb[0].mxu1 %v1095_v13 }
 0x222   :  { %v1463_v51 = vpop.f32.mrb[0].mxu0 }
 0x223   :  { %v1172_v48 = vadd.f32 %v1463_v51, %v1000_v23  ;;  %v1166_v32 = vpop.f32.mrb[1].mxu0 }
 0x224   :  { %v1167_v36 = vadd.f32 %v1166_v32, %v1000_v23 }
 0x225   :  { %1586 = vtanh.f32 %v1172_v48 }
 0x226   :  { %1588 = vtanh.f32 %v1167_v36  ;;  %v1466_v1 = vpop.f32.mrb[0].mxu1 }
 0x227   :  { %v1182_v56 = vadd.f32 %v1466_v1, %v1000_v23  ;;  %v1176_v53 = vpop.f32.mrb[1].mxu1 }
 0x228   :  { %v1177_v7 = vadd.f32 %v1176_v53, %v1000_v23 }
 0x229   :  { %1590 = vtanh.f32 %v1182_v56 }
 0x22a   :  { %1592 = vtanh.f32 %v1177_v7 }
 0x22f   :  { %v1587_v6 = vpop.eup %1586 }
 0x230   :  { %v1589_v12 = vpop.eup %1588  ;;  %1190 = vst [vmem:[#allocation7 + $0x8] sm:$0xff] %v1587_v6 }
 0x231   :  { %1189 = vst [vmem:[#allocation7] sm:$0xff] %v1589_v12 }
 0x233   :  { %v1591_v22 = vpop.eup %1590 }
 0x234   :  { %v1593_v33 = vpop.eup %1592  ;;  %1192 = vst [vmem:[#allocation7 + $0x18] sm:$0xff] %v1591_v22 }
 0x235   :  { %1191 = vst [vmem:[#allocation7 + $0x10] sm:$0xff] %v1593_v33 }
 0x236   :  { %1649 = shalt.err (!%p1646_p6)
}
 0x237   :  { %s1650_s26 = scalar_lea.hbm %s2090_s4, 512 }
 0x238   :  { %p1651_p7 = scmp.ne.s32.totalorder %s2090_s4, %s1650_s26  ;;  %p1654_p8 = scmp.lt.u32.totalorder %s1650_s26, %s2090_s4 }
 0x23a   :  { %p1656_p9 = pnand %p1654_p8, %p1651_p7 }
 0x23c   :  { %1659 = shalt.err (!%p1656_p9)
}
 0x23d   :  { %s1671_s5 = smov 128   ;;  %s1672_s6 = smov 8  }
 0x23e   :  { %1204 = dma.vmem_to_hbm [thread:$0]  %s1199_s3, 512, %s2090_s4, [#allocation4], %s1671_s5, %s1671_s5, %s1672_s6  }
 0x23f   :  { %1664 = dma.done.wait [#allocation4], 512  }
 0x240   :  { %1665 = vsyncadd [#allocation4], 4294966784 }
 0x241   :  { %1208 = vsyncpa [#allocation3], 1 }
 0x242   :  { %1209 = vsyncpa [#allocation6], 1 }
 0x243   :  { %1210 = vsyncpa [#allocation4], 1 }

</bundles_post_ra>
